<compile_context>
chip_gen: v6e
topology: v6e:2x2x1
jax: 0.10.0
libtpu: 0.0.40
codegen_flags: <defaults>
</compile_context>

<pallas_src>
import jax
import jax.numpy as jnp
from jax.experimental import pallas as pl
from jax.experimental.pallas import tpu as pltpu


# ------------------------------ Pallas kernel -------------------------------

def _outconv_kernel(x_ref, w_ref, b_ref, o_ref):
    # x_ref: (1, Cin, TS)   -- one spatial tile of one batch element
    # w_ref: (Cout, Cin)    -- resident 1x1x1 weight (possibly bf16)
    # b_ref: (Cout, 1)      -- bias, f32 (broadcast over lanes)
    # o_ref: (1, Cout, TS)  -- lane-dense output tile
    x = x_ref[0].astype(w_ref.dtype)
    y = jnp.dot(w_ref[...], x, preferred_element_type=jnp.float32)
    o_ref[0] = (y + b_ref[...]).astype(o_ref.dtype)


# ----------------------------- tile selection --------------------------------

def _pick_tile(S, Cin, Cout, N, itemsize):
    """Pick the lane tile ts.

    Goals: (a) large enough to amortize per-step overhead and produce long
    contiguous DMA rows, (b) double-buffered x+out blocks fit a conservative
    VMEM budget (v7x-safe), (c) preferably a multiple-of-128 divisor of S so
    no jnp.pad / output slice is needed, (d) enough grid steps for 2 TCs.
    Returns (ts, need_pad).
    """
    budget = 20 * 1024 * 1024                       # double-buffered x+out bytes
    ts_budget = budget // (2 * (Cin + Cout) * itemsize)
    ts_steps = max(128, (S * N) // 8)               # keep >= ~8 total grid steps
    ts_max = max(128, (min(ts_budget, ts_steps) // 128) * 128)
    if S <= ts_max:
        return S, False                             # one full-S block, no pad
    # Largest multiple-of-128 divisor of S under the cap -> no pad/slice passes.
    for m in range(ts_max // 128, 0, -1):
        cand = m * 128
        if S % cand == 0:
            return cand, False
    return ts_max, True                             # fallback: pad S up


# -------------------------------- wrapper ------------------------------------

def outconv_3d_1x1(x, weight, bias, *, compute_dtype=None, tile_s=None):
    """1x1x1 Conv3d.

    x:      (N, Cin, D, H, W)
    weight: (Cout, Cin)        (PyTorch (Cout, Cin, 1, 1, 1) squeezed)
    bias:   (Cout,)
    compute_dtype: set to jnp.bfloat16 on v5e / v7x with large Cin/Cout to halve
                   MXU passes (accumulation stays f32).  None keeps x.dtype.
    returns (N, Cout, D, H, W) in x.dtype
    """
    N, Cin, D, H, W = x.shape
    Cout = weight.shape[0]
    S = D * H * W
    itemsize = jnp.dtype(x.dtype).itemsize

    xf = x.reshape(N, Cin, S)
    if compute_dtype is not None:
        weight = weight.astype(compute_dtype)       # cast once, stays resident
    bias2 = bias.astype(jnp.float32).reshape(Cout, 1)

    if tile_s is None:
        ts, need_pad = _pick_tile(S, Cin, Cout, N, itemsize)
    else:
        ts = min(S, max(128, (tile_s // 128) * 128))
        if ts >= S:
            ts = S
        need_pad = (S % ts) != 0

    Sp = pl.cdiv(S, ts) * ts
    if need_pad and Sp != S:
        xf = jnp.pad(xf, ((0, 0), (0, 0), (0, Sp - S)))
    grid = (N, Sp // ts)

    # Scoped-VMEM limit sized to the actual double-buffered block footprint.
    dbuf = 2 * (Cin + Cout) * ts * itemsize
    wbuf = 2 * (Cout * Cin + Cout) * 4
    vmem_limit = int(min(max(dbuf + wbuf + (6 << 20), 16 << 20), 56 << 20))

    out = pl.pallas_call(
        _outconv_kernel,
        out_shape=jax.ShapeDtypeStruct((N, Cout, Sp), x.dtype),
        grid=grid,
        in_specs=[
            pl.BlockSpec((1, Cin, ts), lambda n, s: (n, 0, s)),
            pl.BlockSpec((Cout, Cin), lambda n, s: (0, 0)),
            pl.BlockSpec((Cout, 1), lambda n, s: (0, 0)),
        ],
        out_specs=pl.BlockSpec((1, Cout, ts), lambda n, s: (n, 0, s)),
        compiler_params=pltpu.CompilerParams(
            dimension_semantics=("parallel", "parallel"),
            vmem_limit_bytes=vmem_limit),
    )(xf, weight, bias2)

    if Sp != S:
        out = out[:, :, :S]
    return out.reshape(N, Cout, D, H, W)


# --------------------------- parameters & forward ----------------------------

def init_outconv_params(key, in_channels, out_channels):
    # Mimics PyTorch Conv3d default init: U(-1/sqrt(fan_in), 1/sqrt(fan_in)),
    # fan_in = in_channels * 1 * 1 * 1.
    kw, kb = jax.random.split(key)
    bound = 1.0 / jnp.sqrt(float(in_channels))
    w = jax.random.uniform(kw, (out_channels, in_channels), jnp.float32,
                           minval=-bound, maxval=bound)
    b = jax.random.uniform(kb, (out_channels,), jnp.float32,
                           minval=-bound, maxval=bound)
    return {"w": w, "b": b}


def outconv_forward(x_ncdhw, params):
    return outconv_3d_1x1(x_ncdhw, params["w"], params["b"])


# ----------------------------------- main ------------------------------------

if __name__ == "__main__":
    key = jax.random.PRNGKey(0)
    kx, kp = jax.random.split(key)

    N, Cin, Cout = 2, 4, 8
    D = H = W = 16

    x = jax.random.normal(kx, (N, Cin, D, H, W), jnp.float32)
    params = init_outconv_params(kp, Cin, Cout)

    out = jax.jit(outconv_forward)(x, params)
    out = jax.block_until_ready(out)

    assert out.shape == (N, Cout, D, H, W)
    assert out.dtype == jnp.float32

    # Reference: plain-JAX 1x1x1 conv (per-voxel linear map).
    ref = jnp.einsum("ncs,oc->nos", x.reshape(N, Cin, D * H * W),
                     params["w"]) + params["b"][None, :, None]
    ref = ref.reshape(N, Cout, D, H, W)
    assert jnp.allclose(out, ref, rtol=1e-5, atol=1e-5), (
        float(jnp.max(jnp.abs(out - ref))))

    print("KERNEL_OK")
</pallas_src>

<mosaic_0001>
module attributes {stable_mosaic.version = 11 : i64} {
  func.func @_outconv_kernel(%arg0: i32, %arg1: i32, %arg2: memref<1x4x1024xf32, #tpu.memory_space<vmem>>, %arg3: memref<8x4xf32, #tpu.memory_space<vmem>>, %arg4: memref<8x1xf32, #tpu.memory_space<vmem>>, %arg5: memref<1x8x1024xf32, #tpu.memory_space<vmem>>) attributes {dimension_semantics = [#tpu.dimension_semantics<parallel>, #tpu.dimension_semantics<parallel>], iteration_bounds = array<i64: 2, 4>, scalar_prefetch = 0 : i64, scratch_operands = 0 : i64, tpu.core_type = #tpu.core_type<tc>, window_params = [{transform_indices = @transform_0, window_bounds = array<i64: 1, 4, 1024>}, {pipeline_mode = #tpu.pipeline_mode<synchronous>, transform_indices = @transform_1, window_bounds = array<i64: 8, 4>}, {pipeline_mode = #tpu.pipeline_mode<synchronous>, transform_indices = @transform_2, window_bounds = array<i64: 8, 1>}, {transform_indices = @transform_3, window_bounds = array<i64: 1, 8, 1024>}]} {
    %c0 = arith.constant 0 : index
    %c0_0 = arith.constant 0 : index
    %c0_1 = arith.constant 0 : index
    %0 = vector.load %arg2[%c0, %c0_0, %c0_1] : memref<1x4x1024xf32, #tpu.memory_space<vmem>>, vector<1x4x1024xf32>
    %1 = vector.shape_cast %0 : vector<1x4x1024xf32> to vector<4x1024xf32>
    %c0_2 = arith.constant 0 : index
    %c0_3 = arith.constant 0 : index
    %2 = vector.load %arg3[%c0_2, %c0_3] : memref<8x4xf32, #tpu.memory_space<vmem>>, vector<8x4xf32>
    %cst = arith.constant dense<0.000000e+00> : vector<8x1024xf32>
    %3 = tpu.matmul %2, %1, %cst {dimension_numbers = #tpu.dot_dimension_numbers<[1], [0], [0], [1], [0, 0, 1, 1], [], []>} : vector<8x4xf32>, vector<4x1024xf32>, vector<8x1024xf32> -> vector<8x1024xf32>
    %c0_4 = arith.constant 0 : index
    %c0_5 = arith.constant 0 : index
    %4 = vector.load %arg4[%c0_4, %c0_5] : memref<8x1xf32, #tpu.memory_space<vmem>>, vector<8x1xf32>
    %5 = vector.broadcast %4 : vector<8x1xf32> to vector<8x1024xf32>
    %6 = arith.addf %3, %5 : vector<8x1024xf32>
    %c0_6 = arith.constant 0 : index
    %c0_7 = arith.constant 0 : index
    %c0_8 = arith.constant 0 : index
    %7 = vector.load %arg5[%c0_6, %c0_7, %c0_8] : memref<1x8x1024xf32, #tpu.memory_space<vmem>>, vector<1x8x1024xf32>
    %8 = vector.shape_cast %7 : vector<1x8x1024xf32> to vector<8x1024xf32>
    %9 = vector.shape_cast %6 : vector<8x1024xf32> to vector<1x8x1024xf32>
    tpu.vector_store %arg5[%c0_6, %c0_7, %c0_8], %9 {strides = array<i32>} : memref<1x8x1024xf32, #tpu.memory_space<vmem>>, vector<1x8x1024xf32>,
    return
  }
  func.func @transform_0(%arg0: i32, %arg1: i32) -> (i32, i32, i32) {
    %c0_i32 = arith.constant 0 : i32
    %c0_i32_0 = arith.constant 0 : i32
    return %arg0, %c0_i32, %arg1 : i32, i32, i32
  }
  func.func @transform_1(%arg0: i32, %arg1: i32) -> (i32, i32) {
    %c0_i32 = arith.constant 0 : i32
    %c0_i32_0 = arith.constant 0 : i32
    %c0_i32_1 = arith.constant 0 : i32
    return %c0_i32, %c0_i32_0 : i32, i32
  }
  func.func @transform_2(%arg0: i32, %arg1: i32) -> (i32, i32) {
    %c0_i32 = arith.constant 0 : i32
    %c0_i32_0 = arith.constant 0 : i32
    %c0_i32_1 = arith.constant 0 : i32
    return %c0_i32, %c0_i32_0 : i32, i32
  }
  func.func @transform_3(%arg0: i32, %arg1: i32) -> (i32, i32, i32) {
    %c0_i32 = arith.constant 0 : i32
    %c0_i32_0 = arith.constant 0 : i32
    return %arg0, %c0_i32, %arg1 : i32, i32, i32
  }
}

</mosaic_0001>

<bundles_post_ra>
// kernel: outconv_forward.1
= control target key start
LH: loop header
LB: loop body
LE: loop exit
PB: predicated region body
PF: predicated region fallthrough
CT: control target
= control target key end

     0   :  { %s766_s12 = smov 0   ;;  %s768_s13 = smov 0   ;;  %s839_s0 = inlined_call_operand.vmem [shape: f32[2,4,4096], index: 0, kind: input, shape index: {}]   ;;  %s840_s1 = inlined_call_operand.vmem [shape: f32[8,4], index: 1, kind: input, shape index: {}]   ;;  %s841_s2 = inlined_call_operand.vmem [shape: f32[8,1], index: 2, kind: input, shape index: {}]   ;;  %s842_s3 = inlined_call_operand.vmem [shape: f32[2,8,4096], index: 3, kind: output, shape index: {}]  }
   0x1   :  { %s770_s14 = smov 0   ;;  %s772_s15 = smov 0  }
   0x2   :  { %s774_s16 = smov 0  }
   0x3 LB: > { %s22_s17 = sadd.s32 1, %s734_s14  ;;  %s25_s18 = sadd.s32 1, %s738_s15  ;;  %s742_s16 = sphi %s774_s16, %s13_s16   ;;  %s738_s15 = sphi %s772_s15, %s846_s15   ;;  %s734_s14 = sphi %s770_s14, %s845_s14   ;;  %s730_s13 = sphi %s768_s13, %s844_s13   ;;  %s726_s12 = sphi %s766_s12, %s843_s12  }
   0x4   : > { %p23_p0 = scmp.ge.s32.totalorder %s22_s17, 4  ;;  %p636_p1 = scmp.ge.s32.totalorder %s742_s16, 1 }
   0x5   : > { %p158_p2 = scmp.lt.s32.totalorder %s742_s16, 9 }
   0x6   : > { %s848_s17 = smov (%p23_p0, %s22_s17), 0  ;;  %s850_s18 = smov (!%p23_p0, %s25_s18), %s738_s15 }
   0x7   : > { %p159_p3 = pnand %p636_p1, %p158_p2  ;;  %p27_p4 = scmp.ge.s32.totalorder %s850_s18, 2 }
   0x8   : > { %s637_s19 = sshll.u32 (!%p159_p3), %s726_s12, 3  ;;  %p191_p5 = scmp.lt.s32.totalorder (!%p159_p3), %s730_s13, 1 }
   0x9   : > { %s852_s18 = smov (%p27_p4, %s850_s18), 0  ;;  %162 = sbr.rel (%p159_p3) target bundleno = 226 (0xe2), region = 32 }
   0xa   : > { %p193_p6 = scmp.lt.s32.totalorder (!%p159_p3), %s637_s19, 31 }
   0xe   : > { %v744_v0 = vmov 0.0   ;;  %v215_v1 = vld [vmem:[%s841_s2] sm:$0xff]  ;;  %s854_s13 = smov (!%p191_p5, %s730_s13), 1  ;;  %v745_v2 = vmov 0   ;;  %s856_s19 = smov (!%p193_p6, %s637_s19), 31  ;;  %vm233_vm0 = vcmask 1043456  }
   0xf   : > { %314 = vmatprep.mubr.f32.mxu0 %v744_v0  ;;  %385 = vmatprep.mubr.f32.mxu1 %v744_v0  ;;  %s638_s22 = sshll.u32 %s854_s13, 5  ;;  %v214_v9 = vld [vmem:[%s840_s1] sm:$0xff]  ;;  %vm229_vm1 = vcmask 31744  }
  0x10   : > { %699 = vset.pattern.permute.xlu0 %v745_v2  ;;  %s799_s23 = sadd.s32 %s638_s22, %s856_s19 }
  0x11   : > { %218 = vperm.xlu0 %699, %v215_v1   ;;  %s639_s24 = sshll.u32 %s799_s23, 2  ;;  %s642_s30 = sshll.u32 %s799_s23, 3 }
  0x12   : > { %s198_s27 = scalar_lea.vmem %s839_s0, %s639_s24  ;;  %s208_s6 = scalar_lea.vmem %s842_s3, %s642_s30 }
  0x13   : > { %v210_v3 = vld [vmem:[%s198_s27] sm:$0xff]  ;;  %v211_v4 = vld [vmem:[%s198_s27 + $0x8] sm:$0xff]  ;;  %v212_v5 = vld [vmem:[%s198_s27 + $0x10] sm:$0xff] }
  0x14   : > { %v225_v6 = vcombine.high %v210_v3, %v210_v3  ;;  %v226_v7 = vcombine.high %v211_v4, %v211_v4  ;;  %v213_v8 = vld [vmem:[%s198_s27 + $0x18] sm:$0xff]  ;;  %v227_v10 = vcombine.high %v212_v5, %v212_v5 }
  0x15   : > { %v228_v11 = vcombine.high %v213_v8, %v213_v8 }
  0x16   : > { %643 = vmatprep.subr.msk.mxu0 %vm233_vm0, %v225_v6  ;;  %646 = vmatprep.subr.msk.mxu1 %vm233_vm0, %v226_v7 }
  0x17   : > { %644 = vmatpush1.msk.msra.mxu0 %vm233_vm0, %v210_v3  ;;  %647 = vmatpush1.msk.msra.mxu1 %vm233_vm0, %v211_v4 }
  0x18   : > { %645 = vmatmul.mubr.msk.f32.vlgmr.msra.gmra.mxu0 %vm229_vm1, %v214_v9  ;;  %648 = vmatmul.mubr.msk.f32.vlgmr.msra.gmra.mxu1 %vm229_vm1, %v214_v9 }
  0x19   : > { %649 = vmatprep.subr.msk.mxu0 %vm233_vm0, %v227_v10  ;;  %652 = vmatprep.subr.msk.mxu1 %vm233_vm0, %v228_v11 }
  0x1a   : > { %650 = vmatpush1.msk.msra.mxu0 %vm233_vm0, %v212_v5  ;;  %653 = vmatpush1.msk.msra.mxu1 %vm233_vm0, %v213_v8 }
  0x1b   : > { %456 = vmatprep.mubr.f32.mxu0 %v744_v0  ;;  %527 = vmatprep.mubr.f32.mxu1 %v744_v0 }
  0x1c   : > { %651 = vmatmul.mubr.msk.f32.vlgmr.msra.gmra.mxu0 %vm229_vm1, %v214_v9  ;;  %654 = vmatmul.mubr.msk.f32.vlgmr.msra.gmra.mxu1 %vm229_vm1, %v214_v9 }
  0x8c   : > { %v219_v12 = vpop.permute.xlu0 %218 }
  0xd8   : > { %v316_v13 = vpop.f32.mrf.mxu0  ;;  %v387_v14 = vpop.f32.mrf.mxu1 }
  0xd9   : > { %v317_v15 = vadd.f32 %v316_v13, %v219_v12  ;;  %v388_v16 = vadd.f32 %v387_v14, %v219_v12 }
  0xda   : > { %v318_v17 = vpop.f32.mrf.mxu0  ;;  %v389_v18 = vpop.f32.mrf.mxu1 }
  0xdb   : > { %534 = vst [vmem:[%s208_s6] sm:$0xff] %v317_v15  ;;  %536 = vst [vmem:[%s208_s6 + $0x10] sm:$0xff] %v388_v16  ;;  %v319_v19 = vadd.f32 %v318_v17, %v219_v12  ;;  %v390_v20 = vadd.f32 %v389_v18, %v219_v12 }
  0xdc   : > { %v458_v21 = vpop.f32.mrf.mxu0  ;;  %v529_v22 = vpop.f32.mrf.mxu1 }
  0xdd   : > { %535 = vst [vmem:[%s208_s6 + $0x8] sm:$0xff] %v319_v19  ;;  %537 = vst [vmem:[%s208_s6 + $0x18] sm:$0xff] %v390_v20  ;;  %v459_v23 = vadd.f32 %v458_v21, %v219_v12  ;;  %v530_v24 = vadd.f32 %v529_v22, %v219_v12 }
  0xde   : > { %v460_v25 = vpop.f32.mrf.mxu0  ;;  %v531_v26 = vpop.f32.mrf.mxu1 }
  0xdf   : > { %538 = vst [vmem:[%s208_s6 + $0x20] sm:$0xff] %v459_v23  ;;  %540 = vst [vmem:[%s208_s6 + $0x30] sm:$0xff] %v530_v24  ;;  %v461_v27 = vadd.f32 %v460_v25, %v219_v12  ;;  %v532_v28 = vadd.f32 %v531_v26, %v219_v12 }
  0xe1   : > { %539 = vst [vmem:[%s208_s6 + $0x28] sm:$0xff] %v461_v27  ;;  %541 = vst [vmem:[%s208_s6 + $0x38] sm:$0xff] %v532_v28 }
  0xe2 PF: > { %s13_s16 = sadd.s32 1, %s742_s16   ;;  %s843_s12 = smov %s734_s14 }
  0xe3   : > { %p10_p7 = scmp.ge.s32.totalorder %s13_s16, 10   ;;  %s844_s13 = smov %s738_s15 }
  0xe4   : > { %s845_s14 = smov %s848_s17  ;;  %s846_s15 = smov %s852_s18 }
  0xe5   :  { %12 = sbr.rel (!%p10_p7) target bundleno = 3 (0x3), region = 62 }

</bundles_post_ra>
